<compile_context>
chip_gen: v5e
topology: v5e:2x2
jax: 0.10.0
libtpu: 0.0.40
codegen_flags: <defaults>
</compile_context>

<pallas_src>
import functools

import jax
import jax.numpy as jnp
from jax.experimental import pallas as pl
from jax.experimental.pallas import tpu as pltpu


def gcn_kernel(a_ref, x_ref, w_ref, b_ref, o_ref):
    # a_ref: (N, N)          normalized adjacency (compute dtype, shared)
    # x_ref: (Bt, N, F_in)   batch tile of node features (compute dtype)
    # w_ref: (F_in, F_out)   projection weight (compute dtype, shared)
    # b_ref: (1, F_out)      bias (f32, shared)
    # o_ref: (Bt, N, F_out)  output tile
    a = a_ref[...]
    w = w_ref[...]
    b = b_ref[...]
    bt, _, f_in = x_ref.shape
    f_out = w_ref.shape[1]

    for i in range(bt):  # static unroll; Bt is small (batch mostly on the grid)
        x_b = x_ref[i]                                    # (N, F_in)
        if f_in <= f_out:
            # Aggregate first: the quadratic (N, N) matmul runs at the narrow
            # width F_in; the projection then widens to F_out.
            agg = jnp.dot(a, x_b, preferred_element_type=jnp.float32)
            out = jnp.dot(agg.astype(w.dtype), w,
                          preferred_element_type=jnp.float32)
        else:
            sup = jnp.dot(x_b, w, preferred_element_type=jnp.float32)
            out = jnp.dot(a, sup.astype(a.dtype),
                          preferred_element_type=jnp.float32)
        out = jnp.maximum(out + b, 0.0)                   # f32 epilogue
        o_ref[i] = out.astype(o_ref.dtype)


@functools.partial(jax.jit, static_argnames=("block_batch", "compute_dtype"))
def norm_spatiotemporal_gcn(x, adjacency, weight, bias, *, block_batch=None,
                            compute_dtype=jnp.bfloat16):
    """x: (B, N, F_in), adjacency: (N, N), weight: (F_in, F_out), bias: (F_out,)."""
    B, N, F_in = x.shape
    F_out = weight.shape[1]

    # --- Normalized adjacency (tiny; plain JAX, fused under this jit) --------
    a_hat = adjacency.astype(jnp.float32) + jnp.eye(N, dtype=jnp.float32)
    d = jax.lax.rsqrt(jnp.sum(a_hat, axis=1))             # deg >= 1 (self-loop)
    a_norm = (d[:, None] * a_hat) * d[None, :]            # D^-1/2 A_hat D^-1/2

    # --- Batch tiling: default grid >= 2 so v7x's two TensorCores get work ---
    if block_batch is None:
        Bt = max(1, B // 2)
    else:
        Bt = int(block_batch)
    if Bt < 1 or B % Bt != 0:
        Bt = 1                                            # robust fallback

    a_c = a_norm.astype(compute_dtype)
    x_c = x.astype(compute_dtype)
    w_c = weight.astype(compute_dtype)
    b_f32 = bias.astype(jnp.float32).reshape(1, F_out)

    out = pl.pallas_call(
        gcn_kernel,
        out_shape=jax.ShapeDtypeStruct((B, N, F_out), x.dtype),
        grid_spec=pltpu.PrefetchScalarGridSpec(
            num_scalar_prefetch=0,
            grid=(B // Bt,),
            in_specs=[
                pl.BlockSpec((N, N), lambda i: (0, 0)),            # A (shared)
                pl.BlockSpec((Bt, N, F_in), lambda i: (i, 0, 0)),  # x tile
                pl.BlockSpec((F_in, F_out), lambda i: (0, 0)),     # W (shared)
                pl.BlockSpec((1, F_out), lambda i: (0, 0)),        # bias
            ],
            out_specs=pl.BlockSpec((Bt, N, F_out), lambda i: (i, 0, 0)),
        ),
        compiler_params=pltpu.CompilerParams(
            # Batch tiles are fully independent -> shard across TCs on v7x.
            dimension_semantics=("parallel",),
        ),
    )(a_c, x_c, w_c, b_f32)
    return out


def reference(x, adjacency, weight, bias):
    n = adjacency.shape[0]
    a_hat = adjacency + jnp.eye(n, dtype=adjacency.dtype)
    d = jnp.power(jnp.sum(a_hat, axis=1), -0.5)
    a_norm = (d[:, None] * a_hat) * d[None, :]
    support = jnp.matmul(x, weight)
    out = jnp.matmul(a_norm, support) + bias
    return jax.nn.relu(out)


if __name__ == "__main__":
    B, N, F_in, F_out = 2, 16, 16, 32

    key = jax.random.PRNGKey(0)
    k_x, k_a, k_w = jax.random.split(key, 3)

    # Inputs
    x = jax.random.normal(k_x, (B, N, F_in), dtype=jnp.float32)
    # Random symmetric 0/1 adjacency (self-loop added inside norm via +I)
    a_raw = jax.random.uniform(k_a, (N, N)) < 0.3
    adjacency = jnp.asarray(a_raw | a_raw.T, dtype=jnp.float32)
    adjacency = adjacency * (1.0 - jnp.eye(N, dtype=jnp.float32))

    # Parameters: xavier_uniform_ for weight, zeros_ for bias (deterministic)
    bound = (6.0 / (F_in + F_out)) ** 0.5
    weight = jax.random.uniform(k_w, (F_in, F_out), dtype=jnp.float32,
                                minval=-bound, maxval=bound)
    bias = jnp.zeros((F_out,), dtype=jnp.float32)

    ref = reference(x, adjacency, weight, bias)

    # Exact-precision check of the kernel structure (f32 compute path).
    out_f32 = jax.block_until_ready(
        norm_spatiotemporal_gcn(x, adjacency, weight, bias,
                                compute_dtype=jnp.float32))
    assert out_f32.shape == (B, N, F_out)
    assert jnp.allclose(out_f32, ref, atol=1e-5, rtol=1e-5), "f32 mismatch"

    # Default (performance) path: bf16 operands, f32 accumulation + epilogue.
    out = jax.block_until_ready(
        norm_spatiotemporal_gcn(x, adjacency, weight, bias))
    assert out.shape == (B, N, F_out)
    assert jnp.allclose(out, ref, atol=5e-2, rtol=5e-2), "bf16 mismatch"

    print("KERNEL_OK")
</pallas_src>

<mosaic_0001>
module attributes {stable_mosaic.version = 11 : i64} {
  func.func @gcn_kernel(%arg0: i32, %arg1: memref<16x16xf32, #tpu.memory_space<vmem>>, %arg2: memref<1x16x16xf32, #tpu.memory_space<vmem>>, %arg3: memref<16x32xf32, #tpu.memory_space<vmem>>, %arg4: memref<1x32xf32, #tpu.memory_space<vmem>>, %arg5: memref<1x16x32xf32, #tpu.memory_space<vmem>>) attributes {dimension_semantics = [#tpu.dimension_semantics<parallel>], iteration_bounds = array<i64: 2>, scalar_prefetch = 0 : i64, scratch_operands = 0 : i64, tpu.core_type = #tpu.core_type<tc>, window_params = [{pipeline_mode = #tpu.pipeline_mode<synchronous>, transform_indices = @transform_0, window_bounds = array<i64: 16, 16>}, {transform_indices = @transform_1, window_bounds = array<i64: 1, 16, 16>}, {pipeline_mode = #tpu.pipeline_mode<synchronous>, transform_indices = @transform_2, window_bounds = array<i64: 16, 32>}, {pipeline_mode = #tpu.pipeline_mode<synchronous>, transform_indices = @transform_3, window_bounds = array<i64: 1, 32>}, {transform_indices = @transform_4, window_bounds = array<i64: 1, 16, 32>}]} {
    %c0 = arith.constant 0 : index
    %c0_0 = arith.constant 0 : index
    %0 = vector.load %arg1[%c0, %c0_0] : memref<16x16xf32, #tpu.memory_space<vmem>>, vector<16x16xf32>
    %c0_1 = arith.constant 0 : index
    %c0_2 = arith.constant 0 : index
    %1 = vector.load %arg3[%c0_1, %c0_2] : memref<16x32xf32, #tpu.memory_space<vmem>>, vector<16x32xf32>
    %c0_3 = arith.constant 0 : index
    %c0_4 = arith.constant 0 : index
    %2 = vector.load %arg4[%c0_3, %c0_4] : memref<1x32xf32, #tpu.memory_space<vmem>>, vector<1x32xf32>
    %c0_5 = arith.constant 0 : index
    %c0_6 = arith.constant 0 : index
    %c0_7 = arith.constant 0 : index
    %3 = vector.load %arg2[%c0_5, %c0_6, %c0_7] : memref<1x16x16xf32, #tpu.memory_space<vmem>>, vector<1x16x16xf32>
    %4 = vector.shape_cast %3 : vector<1x16x16xf32> to vector<16x16xf32>
    %cst = arith.constant dense<0.000000e+00> : vector<16x16xf32>
    %5 = tpu.matmul %0, %4, %cst {dimension_numbers = #tpu.dot_dimension_numbers<[1], [0], [0], [1], [0, 0, 1, 1], [], []>} : vector<16x16xf32>, vector<16x16xf32>, vector<16x16xf32> -> vector<16x16xf32>
    %cst_8 = arith.constant dense<0.000000e+00> : vector<16x32xf32>
    %6 = tpu.matmul %5, %1, %cst_8 {dimension_numbers = #tpu.dot_dimension_numbers<[1], [0], [0], [1], [0, 0, 1, 1], [], []>} : vector<16x16xf32>, vector<16x32xf32>, vector<16x32xf32> -> vector<16x32xf32>
    %7 = vector.broadcast %2 : vector<1x32xf32> to vector<16x32xf32>
    %8 = arith.addf %6, %7 : vector<16x32xf32>
    %cst_9 = arith.constant 0.000000e+00 : f32
    %9 = vector.broadcast %cst_9 : f32 to vector<16x32xf32>
    %10 = arith.maximumf %8, %9 : vector<16x32xf32>
    %c0_10 = arith.constant 0 : index
    %c0_11 = arith.constant 0 : index
    %c0_12 = arith.constant 0 : index
    %11 = vector.load %arg5[%c0_10, %c0_11, %c0_12] : memref<1x16x32xf32, #tpu.memory_space<vmem>>, vector<1x16x32xf32>
    %12 = vector.shape_cast %11 : vector<1x16x32xf32> to vector<16x32xf32>
    %13 = vector.shape_cast %10 : vector<16x32xf32> to vector<1x16x32xf32>
    tpu.vector_store %arg5[%c0_10, %c0_11, %c0_12], %13 {strides = array<i32>} : memref<1x16x32xf32, #tpu.memory_space<vmem>>, vector<1x16x32xf32>,
    return
  }
  func.func @transform_0(%arg0: i32) -> (i32, i32) {
    %c0_i32 = arith.constant 0 : i32
    %c0_i32_0 = arith.constant 0 : i32
    %c0_i32_1 = arith.constant 0 : i32
    return %c0_i32, %c0_i32_0 : i32, i32
  }
  func.func @transform_1(%arg0: i32) -> (i32, i32, i32) {
    %c0_i32 = arith.constant 0 : i32
    %c0_i32_0 = arith.constant 0 : i32
    %c0_i32_1 = arith.constant 0 : i32
    return %arg0, %c0_i32, %c0_i32_0 : i32, i32, i32
  }
  func.func @transform_2(%arg0: i32) -> (i32, i32) {
    %c0_i32 = arith.constant 0 : i32
    %c0_i32_0 = arith.constant 0 : i32
    %c0_i32_1 = arith.constant 0 : i32
    return %c0_i32, %c0_i32_0 : i32, i32
  }
  func.func @transform_3(%arg0: i32) -> (i32, i32) {
    %c0_i32 = arith.constant 0 : i32
    %c0_i32_0 = arith.constant 0 : i32
    %c0_i32_1 = arith.constant 0 : i32
    return %c0_i32, %c0_i32_0 : i32, i32
  }
  func.func @transform_4(%arg0: i32) -> (i32, i32, i32) {
    %c0_i32 = arith.constant 0 : i32
    %c0_i32_0 = arith.constant 0 : i32
    %c0_i32_1 = arith.constant 0 : i32
    return %arg0, %c0_i32, %c0_i32_0 : i32, i32, i32
  }
}

</mosaic_0001>

<bundles_post_ra>
// kernel: norm_spatiotemporal_gcn.1
= control target key start
LH: loop header
LB: loop body
LE: loop exit
PB: predicated region body
PF: predicated region fallthrough
CT: control target
= control target key end

     0   :  { %9 = vsyncpa [#allocation3], 0  ;;  %s692_s0 = inlined_call_operand.vmem [shape: f32[16,16], index: 0, kind: input, shape index: {}]   ;;  %s693_s1 = inlined_call_operand.vmem [shape: f32[2,16,16], index: 1, kind: input, shape index: {}]   ;;  %s694_s2 = inlined_call_operand.hbm [shape: f32[16,32], index: 2, kind: input, shape index: {}]   ;;  %s695_s3 = inlined_call_operand.vmem [shape: f32[1,32], index: 3, kind: input, shape index: {}]   ;;  %s696_s4 = inlined_call_operand.hbm [shape: f32[2,16,32], index: 4, kind: output, shape index: {}]  }
   0x1   :  { %10 = vsyncpa [#allocation4], 0 }
   0x2   :  { %12 = vsyncpa [#allocation4 + $0x1], 0  ;;  %s584_s15 = smov 0   ;;  %s586_s16 = smov 0  }
   0x3   :  { %s588_s17 = smov 0   ;;  %s590_s18 = smov 0  }
   0x4 LB: > { %s605_s19 = sadd.s32 4294967295, %s552_s18   ;;  %s377_s20 = sadd.s32 4294967294, %s552_s18   ;;  %s552_s18 = sphi %s590_s18, %s702_s18   ;;  %s548_s17 = sphi %s588_s17, %s701_s17   ;;  %s544_s16 = sphi %s586_s16, %s700_s16   ;;  %s540_s15 = sphi %s584_s15, %s699_s15  }
   0x5   : > { %s609_s21 = sadd.s32 1, %s552_s18   ;;  %s114_s22 = sadd.s32 1, %s548_s17 }
   0x6   : > { %s111_s23 = ssub.s32 %s552_s18, %s609_s21  ;;  %p124_p0 = scmp.ne.s32.totalorder %s548_s17, %s544_s16 }
   0x7   : > { %p112_p1 = scmp.eq.s32.totalorder %s111_s23, 0  ;;  %p125_p2 = scmp.eq.s32.totalorder %s605_s19, 1 }
   0x8   : > { %p130_p3 = scmp.ne.s32.totalorder %s544_s16, %s540_s15  ;;  %p131_p4 = scmp.eq.s32.totalorder %s377_s20, 1 }
   0x9   : > { %s620_s24 = scalar_select %p112_p1, %s548_s17, %s114_s22  }
   0xa   : > { %p622_p5 = por %p125_p2, %p124_p0  ;;  %p626_p6 = por %p131_p4, %p130_p3 }
   0xb   : > { %p378_p7 = scmp.ge.s32.totalorder %s552_s18, 1  ;;  %p138_p8 = scmp.lt.s32.totalorder %s552_s18, 3 }
   0xc   : > { %p415_p9 = scmp.eq.s32.totalorder %s605_s19, 0  ;;  %s152_s29 = sshll.u32 %s694_s2, 4  ;;  %s153_s29 = int_to_ptr.hbm [resolvable:$true] %s152_s29 }
   0xd   : > { %p139_p10 = pnand %p378_p7, %p138_p8  ;;  %s554_s30 = smov [#allocation2]  }
   0xe   : > { %s154_s5 = sshll.u32 %s554_s30, 4  ;;  %s555_s6 = smov 128   ;;  %s155_s5 = int_to_ptr.vmem [resolvable:$true] %s154_s5 }
   0xf   : > { %p407_p11 = pneg %p139_p10  ;;  %s556_s7 = smov 8  }
  0x10   : > { %181 = sbr.rel (%p139_p10) target bundleno = 304 (0x130), region = 36 }
  0x11   : > { %p408_p12 = pnand %p415_p9, %p407_p11 }
  0x13   : > { %410 = dma.hbm_to_vmem [thread:$0]  (!%p408_p12), %s153_s29, 256, %s155_s5, [#allocation3], %s555_s6, %s555_s6, %s556_s7  }
  0x15   : > { %531 = dma.done.wait (%p415_p9), [#allocation3], 256  }
  0x16   : > { %533 = vsyncadd (%p415_p9), [#allocation3], 4294967040  ;;  %p208_p13 = scmp.lt.s32.totalorder %s605_s19, 1  ;;  %v214_v2 = vld [vmem:[%s692_s0 + $0x8] sm:$0xff]  ;;  %vm220_vm0 = vcmask 130048   ;;  %v213_v3 = vld [vmem:[%s692_s0] sm:$0xff] }
  0x17   : > { %v216_v4 = vld [vmem:[#allocation2 + $0x8] sm:$0xff]  ;;  %v215_v5 = vld [vmem:[#allocation2] sm:$0xff]  ;;  %s205_s23 = sand.u32 1, %s544_s16   ;;  %vm284_vm1 = vcmask 261120   ;;  %s396_s5 = sshll.u32 %s605_s19, 4 }
  0x18   : > { %s209_s8 = scalar_select %p208_p13, %s605_s19, 1  ;;  %399 = vmatpush.msra.mxu3 %v216_v4  ;;  %273 = vmatpush.msra.mxu1 %v216_v4  ;;  %v455_v8 = vld [vmem:[%s695_s3] ss:$0 sm:$0xff] }
  0x19   : > { %s383_s29 = sshll.u32 %s205_s23, 4  ;;  %s288_s11 = scalar_lea.sflag [#allocation4], %s205_s23 }
  0x1a   : > { %s395_s9 = sshll.u32 %s209_s8, 4  ;;  %400 = vmatpush.msra.mxu3 %v215_v5  ;;  %274 = vmatpush.msra.mxu1 %v215_v5  ;;  %s207_s30 = scalar_lea.vmem [#allocation5], %s383_s29 }
  0x1b   : > { %s212_s12 = scalar_lea.vmem %s693_s1, %s395_s9  ;;  %s299_s8 = scalar_lea.hbm %s696_s4, %s396_s5 }
  0x1c   : > { %v219_v0 = vld [vmem:[%s212_s12 + $0x8] sm:$0xff]  ;;  %v218_v1 = vld [vmem:[%s212_s12] sm:$0xff]  ;;  %s300_s9 = sshll.u32 %s207_s30, 4  ;;  %s302_s10 = sshll.u32 %s299_s8, 4  ;;  %s301_s9 = int_to_ptr.vmem [resolvable:$true] %s300_s9  ;;  %s303_s10 = int_to_ptr.hbm [resolvable:$true] %s302_s10 }
  0x1d   : > { %397 = vmatpush.msra.mxu2 %v219_v0  ;;  %241 = vmatpush.msra.mxu0 %v219_v0  ;;  %s500_s12 = sshra.s32 %s303_s10, 4  ;;  %s506_s20 = scalar_lea.hbm %s696_s4, 32  ;;  %s501_s12 = int_to_ptr.hbm [resolvable:$true] %s500_s12 }
  0x1e   : > { %s502_s13 = scalar_lea.hbm %s501_s12, 16  ;;  %p507_p3 = scmp.lt.s32.totalorder %s501_s12, %s696_s4 }
  0x1f   : > { %398 = vmatpush.msra.mxu2 %v218_v1  ;;  %242 = vmatpush.msra.mxu0 %v218_v1  ;;  %p503_p0 = scmp.ne.s32.totalorder %s501_s12, %s502_s13  ;;  %p508_p4 = scmp.lt.s32.totalorder %s506_s20, %s502_s13 }
  0x20   : > { %387 = vmatmul.msk.f32.vlgmr.msra.gmra.mxu2 %vm220_vm0, %v214_v2  ;;  %386 = vmatmul.msk.f32.vlgmr.msra.gmra.mxu0 %vm220_vm0, %v213_v3 }
  0x21   : > { %p504_p1 = pnand %p503_p0, %p622_p5  ;;  %p509_p7 = por %p508_p4, %p507_p3 }
  0x23   : > { %p505_p2 = pneg %p504_p1 }
  0x25   : > { %p510_p8 = pnand %p509_p7, %p505_p2 }
  0x9d   : > { %v244_v6 = vpop.f32.mrf.mxu0 }
  0x9e   : > { %388 = vmatmul.msk.f32.vlgmr.msra.gmra.mxu1 %vm220_vm0, %v244_v6 }
  0xa3   : > { %v247_v7 = vpop.f32.mrf.mxu2 }
  0xa4   : > { %389 = vmatmul.msk.f32.vlgmr.msra.gmra.mxu3 %vm220_vm0, %v247_v7 }
 0x11b   : > { %v276_v9 = vpop.f32.mrf.mxu1 }
 0x11c   : > { %v277_v10 = vadd.f32 %v455_v8, %v276_v9 }
 0x11e   : > { %v282_v11 = vmax.f32 %v277_v10, 0.0 }
 0x120   : > { %285 = vst.msk [vmem:[%s207_s30] sm:$0xff] %vm284_vm1, %v282_v11 }
 0x127   : > { %v279_v12 = vpop.f32.mrf.mxu3 }
 0x128   : > { %v280_v13 = vadd.f32 %v455_v8, %v279_v12 }
 0x12a   : > { %v283_v14 = vmax.f32 %v280_v13, 0.0 }
 0x12c   : > { %286 = vst.msk [vmem:[%s207_s30 + $0x8] sm:$0xff] %vm284_vm1, %v283_v14 }
 0x12d   : > { %513 = shalt.err (!%p510_p8)
}
 0x12e   : > { %s557_s23 = smov 128   ;;  %s558_s28 = smov 8  }
 0x12f   : > { %405 = dma.vmem_to_hbm [thread:$0]  (%p622_p5), %s301_s9, 256, %s303_s10, %s288_s11, %s557_s23, %s557_s23, %s558_s28  }
 0x130 PF: > { %p417_p9 = scmp.ge.s32.totalorder %s552_s18, 2  ;;  %s317_s29 = sand.u32 1, %s540_s15  }
 0x131   : > { %s318_s30 = scalar_lea.sflag [#allocation4], %s317_s29 }
 0x132   : > { %p412_p10 = pnand %p417_p9, %p626_p6 }
 0x134   : > { %p413_p11 = pneg %p412_p10 }
 0x136   : > { %535 = dma.done.wait (%p413_p11), %s318_s30, 256  }
 0x137   : > { %537 = vsyncadd (%p413_p11), %s318_s30, 4294967040  ;;  %p15_p12 = scmp.ge.s32.totalorder %s609_s21, 4   ;;  %s699_s15 = smov %s544_s16 }
 0x138   : > { %s700_s16 = smov %s548_s17  ;;  %s701_s17 = smov %s620_s24 }
 0x139   : > { %s702_s18 = smov %s609_s21  ;;  %17 = sbr.rel (!%p15_p12) target bundleno = 4 (0x4), region = 76 }
 0x13e   :  { %324 = vsyncpa [#allocation3], 1 }
 0x13f   :  { %326 = vsyncpa [#allocation3 + $0x1], 1 }
 0x140   :  { %327 = vsyncpa [#allocation4], 1 }
 0x141   :  { %329 = vsyncpa [#allocation4 + $0x1], 1 }

</bundles_post_ra>
